<compile_context>
chip_gen: v7x
topology: tpu7x:2x2x1
jax: 0.10.0
libtpu: 0.0.40
codegen_flags: <defaults>
</compile_context>

<pallas_src>
import functools

import jax
import jax.numpy as jnp
import numpy as np
from jax.experimental import pallas as pl
from jax.experimental.pallas import tpu as pltpu


def _expert_gating_kernel(x_ref, w1_ref, b1_ref, w2_ref, b2_ref, eo_ref, out_ref,
                          *, num_experts, k):
    x = x_ref[...]                                                    # (Tt, H)

    # --- router MLP (Dropout is identity in eval mode) ---
    h = jnp.dot(x.astype(w1_ref.dtype), w1_ref[...],
                preferred_element_type=jnp.float32) + b1_ref[...]
    h = jnp.maximum(h, 0.0)                                           # ReLU
    logits = jnp.dot(h.astype(w2_ref.dtype), w2_ref[...],
                     preferred_element_type=jnp.float32) + b2_ref[...]

    # --- softmax over experts ---
    m = jnp.max(logits, axis=-1, keepdims=True)
    e = jnp.exp(logits - m)
    probs = e / jnp.sum(e, axis=-1, keepdims=True)                    # (Tt, E) f32

    # --- top-k routing (unrolled; min-index tie-break matches torch.topk/lax.top_k) ---
    eids = jax.lax.broadcasted_iota(jnp.int32, probs.shape, 1)
    gates, idxs = [], []
    remaining = probs
    for _ in range(k):
        g = jnp.max(remaining, axis=-1, keepdims=True)
        sel = jnp.min(jnp.where(remaining == g, eids, num_experts),
                      axis=-1, keepdims=True)
        gates.append(g)
        idxs.append(sel)
        remaining = jnp.where(eids == sel, -jnp.inf, remaining)

    # --- combine expert outputs ---
    # eo_ref is (E, Tt, H); out[t] = sum_i (sum_kk gate_kk[t] * [idx_kk[t]==i]) * eo[i, t]
    acc = None
    for i in range(num_experts):
        w = gates[0] * (idxs[0] == i).astype(jnp.float32)             # (Tt, 1)
        for kk in range(1, k):
            w = w + gates[kk] * (idxs[kk] == i).astype(jnp.float32)
        contrib = w * eo_ref[i].astype(jnp.float32)                   # (Tt, H)
        acc = contrib if acc is None else acc + contrib               # init from i=0 term
    out_ref[...] = acc.astype(out_ref.dtype)


def _pick_token_tile(T, H, E, x_isz, eo_isz, out_isz, w_isz, vmem_limit_bytes,
                     max_tile=1024):
    """Largest token tile (multiple of 8, dividing T) whose double-buffered working
    set fits the VMEM budget; prefer MXU-aligned multiples of 128 and keep >=2 grid
    steps (v7x megacore) when a >=128 tile still allows it."""
    resident = 2 * (H * H + H * E + H + E) * w_isz            # router params (2 bufs)
    budget = int(0.7 * vmem_limit_bytes) - resident
    per_tok = 2 * (H * x_isz + E * H * eo_isz + H * out_isz)  # x + eo + out (2 bufs)
    cands = [t for t in range(8, min(T, max_tile) + 1, 8)
             if T % t == 0 and t * per_tok <= budget]
    if not cands:
        # TODO(synk): for very large H (>= ~3k f32 on v7x) tile the H-contraction of
        # the first router matmul over an extra 'arbitrary' grid axis instead of
        # keeping the full (H, H) W1 resident.
        return T if (T <= 8 or T % 8 != 0) else 8
    t = max(cands)
    m128 = [c for c in cands if c % 128 == 0]
    if m128 and 2 * max(m128) >= t:
        t = max(m128)
    if T // t < 2:
        halves = [c for c in cands if T // c >= 2 and c >= 128]
        if halves:
            t = max(halves)
    return t


def expert_gating(hidden_states, expert_outputs, w1, b1, w2, b2, *,
                  k=2, t_tile=None, router_dtype=None):
    """hidden_states: [B, S, H]; expert_outputs: [E, B, S, H] (stacked list).
    Router weights stored (in, out) so the kernel computes x @ W + b.
    router_dtype: optionally jnp.bfloat16 to halve the resident router weights
    (default None keeps exact f32 module semantics)."""
    B, S, H = hidden_states.shape
    E = expert_outputs.shape[0]
    T = B * S
    k = min(k, E)

    x = hidden_states.reshape(T, H)
    # Keep expert outputs in their natural expert-major layout; only a metadata
    # reshape here (no HBM pass).  The kernel DMAs (E, t_tile, H) blocks directly.
    # TODO(synk): in a fused MoE layer the experts would write their outputs
    # straight into this kernel's VMEM tiles, removing the eo HBM round-trip.
    eo = expert_outputs.reshape(E, T, H)
    if router_dtype is not None:
        w1 = w1.astype(router_dtype)
        w2 = w2.astype(router_dtype)
    b1 = b1.reshape(1, H).astype(jnp.float32)
    b2 = b2.reshape(1, E).astype(jnp.float32)

    # Raise the scoped VMEM limit (defaults are 16 MiB on v5e / 32 MiB on v6e,v7x)
    # so large token tiles are accepted; cap well below physical (v7x = 64 MiB).
    try:
        vmem_cap = pltpu.get_tpu_info().vmem_capacity_bytes
    except Exception:
        vmem_cap = 64 * 1024 * 1024                      # v7x lower bound
    vmem_limit = int(min(0.75 * vmem_cap, 100 * 1024 * 1024))

    if t_tile is None:
        t_tile = _pick_token_tile(
            T, H, E,
            x.dtype.itemsize, eo.dtype.itemsize, hidden_states.dtype.itemsize,
            w1.dtype.itemsize, vmem_limit)
    assert T % t_tile == 0

    kernel = functools.partial(_expert_gating_kernel, num_experts=E, k=k)
    out = pl.pallas_call(
        kernel,
        out_shape=jax.ShapeDtypeStruct((T, H), hidden_states.dtype),
        grid_spec=pltpu.PrefetchScalarGridSpec(
            num_scalar_prefetch=0,
            grid=(T // t_tile,),
            in_specs=[
                pl.BlockSpec((t_tile, H), lambda i: (i, 0)),       # tokens
                pl.BlockSpec((H, H), lambda i: (0, 0)),            # router W1 (resident)
                pl.BlockSpec((1, H), lambda i: (0, 0)),            # router b1
                pl.BlockSpec((H, E), lambda i: (0, 0)),            # router W2
                pl.BlockSpec((1, E), lambda i: (0, 0)),            # router b2
                # Dominant HBM stream, read in place: E contiguous chunks of
                # t_tile*H elements per grid step.  Bump to pipeline_mode=
                # pl.Buffered(3) if this DMA is still exposed in a trace.
                pl.BlockSpec((E, t_tile, H), lambda i: (0, i, 0)), # expert outputs
            ],
            # When H % 128 == 0 (production sizes) this output is lane-dense; at the
            # tiny test H=32 the store is a masked partial vst (small fraction of bytes).
            out_specs=pl.BlockSpec((t_tile, H), lambda i: (i, 0)),
        ),
        compiler_params=pltpu.CompilerParams(
            dimension_semantics=("parallel",),
            vmem_limit_bytes=vmem_limit),
    )(x, w1, b1, w2, b2, eo)
    return out.reshape(B, S, H)


def reference(hidden_states, expert_outputs, w1, b1, w2, b2, k=2):
    """Pure-JAX mirror of the PyTorch eval forward for correctness checking."""
    h = jnp.maximum(hidden_states @ w1 + b1, 0.0)
    logits = h @ w2 + b2
    probs = jax.nn.softmax(logits, axis=-1)
    gates, idx = jax.lax.top_k(probs, k)
    E = expert_outputs.shape[0]
    comb = jnp.zeros_like(hidden_states)
    for kk in range(k):
        for i in range(E):
            mask = (idx[..., kk] == i)[..., None].astype(hidden_states.dtype)
            comb = comb + gates[..., kk:kk + 1] * expert_outputs[i] * mask
    return comb


if __name__ == "__main__":
    B, S, H, E, K = 2, 8, 32, 4, 2

    key = jax.random.PRNGKey(0)
    k_x, k_eo, k_w1, k_w2 = jax.random.split(key, 4)

    hidden_states = jax.random.normal(k_x, (B, S, H), dtype=jnp.float32)
    expert_outputs = jax.random.normal(k_eo, (E, B, S, H), dtype=jnp.float32)

    # Router params: nn.init.normal_(std=0.02) for weights, zeros for biases.
    w1 = 0.02 * jax.random.normal(k_w1, (H, H), dtype=jnp.float32)
    b1 = jnp.zeros((H,), dtype=jnp.float32)
    w2 = 0.02 * jax.random.normal(k_w2, (H, E), dtype=jnp.float32)
    b2 = jnp.zeros((E,), dtype=jnp.float32)

    out = expert_gating(hidden_states, expert_outputs, w1, b1, w2, b2, k=K)
    out = jax.block_until_ready(out)

    ref = reference(hidden_states, expert_outputs, w1, b1, w2, b2, k=K)
    np.testing.assert_allclose(np.asarray(out), np.asarray(ref), atol=1e-5, rtol=1e-5)

    print("KERNEL_OK")
</pallas_src>

<mosaic_0001>
module attributes {stable_mosaic.version = 11 : i64} {
  func.func @_expert_gating_kernel(%arg0: i32, %arg1: memref<16x32xf32, #tpu.memory_space<vmem>>, %arg2: memref<32x32xf32, #tpu.memory_space<vmem>>, %arg3: memref<1x32xf32, #tpu.memory_space<vmem>>, %arg4: memref<32x4xf32, #tpu.memory_space<vmem>>, %arg5: memref<1x4xf32, #tpu.memory_space<vmem>>, %arg6: memref<4x16x32xf32, #tpu.memory_space<vmem>>, %arg7: memref<16x32xf32, #tpu.memory_space<vmem>>) attributes {dimension_semantics = [#tpu.dimension_semantics<parallel>], iteration_bounds = array<i64: 1>, scalar_prefetch = 0 : i64, scratch_operands = 0 : i64, tpu.core_type = #tpu.core_type<tc>, window_params = [{transform_indices = @transform_0, window_bounds = array<i64: 16, 32>}, {pipeline_mode = #tpu.pipeline_mode<synchronous>, transform_indices = @transform_1, window_bounds = array<i64: 32, 32>}, {pipeline_mode = #tpu.pipeline_mode<synchronous>, transform_indices = @transform_2, window_bounds = array<i64: 1, 32>}, {pipeline_mode = #tpu.pipeline_mode<synchronous>, transform_indices = @transform_3, window_bounds = array<i64: 32, 4>}, {pipeline_mode = #tpu.pipeline_mode<synchronous>, transform_indices = @transform_4, window_bounds = array<i64: 1, 4>}, {transform_indices = @transform_5, window_bounds = array<i64: 4, 16, 32>}, {transform_indices = @transform_6, window_bounds = array<i64: 16, 32>}]} {
    %c0 = arith.constant 0 : index
    %c0_0 = arith.constant 0 : index
    %0 = vector.load %arg1[%c0, %c0_0] : memref<16x32xf32, #tpu.memory_space<vmem>>, vector<16x32xf32>
    %c0_1 = arith.constant 0 : index
    %c0_2 = arith.constant 0 : index
    %1 = vector.load %arg2[%c0_1, %c0_2] : memref<32x32xf32, #tpu.memory_space<vmem>>, vector<32x32xf32>
    %cst = arith.constant dense<0.000000e+00> : vector<16x32xf32>
    %2 = tpu.matmul %0, %1, %cst {dimension_numbers = #tpu.dot_dimension_numbers<[1], [0], [0], [1], [0, 0, 1, 1], [], []>} : vector<16x32xf32>, vector<32x32xf32>, vector<16x32xf32> -> vector<16x32xf32>
    %c0_3 = arith.constant 0 : index
    %c0_4 = arith.constant 0 : index
    %3 = vector.load %arg3[%c0_3, %c0_4] : memref<1x32xf32, #tpu.memory_space<vmem>>, vector<1x32xf32>
    %4 = vector.broadcast %3 : vector<1x32xf32> to vector<16x32xf32>
    %5 = arith.addf %2, %4 : vector<16x32xf32>
    %cst_5 = arith.constant 0.000000e+00 : f32
    %6 = vector.broadcast %cst_5 : f32 to vector<16x32xf32>
    %7 = arith.maximumf %5, %6 : vector<16x32xf32>
    %c0_6 = arith.constant 0 : index
    %c0_7 = arith.constant 0 : index
    %8 = vector.load %arg4[%c0_6, %c0_7] : memref<32x4xf32, #tpu.memory_space<vmem>>, vector<32x4xf32>
    %cst_8 = arith.constant dense<0.000000e+00> : vector<16x4xf32>
    %9 = tpu.matmul %7, %8, %cst_8 {dimension_numbers = #tpu.dot_dimension_numbers<[1], [0], [0], [1], [0, 0, 1, 1], [], []>} : vector<16x32xf32>, vector<32x4xf32>, vector<16x4xf32> -> vector<16x4xf32>
    %c0_9 = arith.constant 0 : index
    %c0_10 = arith.constant 0 : index
    %10 = vector.load %arg5[%c0_9, %c0_10] : memref<1x4xf32, #tpu.memory_space<vmem>>, vector<1x4xf32>
    %11 = vector.broadcast %10 : vector<1x4xf32> to vector<16x4xf32>
    %12 = arith.addf %9, %11 : vector<16x4xf32>
    %cst_11 = arith.constant dense<0xFF800000> : vector<16xf32>
    %13 = vector.multi_reduction <maximumf>, %12, %cst_11 [1] : vector<16x4xf32> to vector<16xf32>
    %14 = vector.shape_cast %13 : vector<16xf32> to vector<16x1xf32>
    %15 = vector.broadcast %14 : vector<16x1xf32> to vector<16x4xf32>
    %16 = arith.subf %12, %15 : vector<16x4xf32>
    %17 = math.exp %16 : vector<16x4xf32>
    %cst_12 = arith.constant dense<0.000000e+00> : vector<16xf32>
    %18 = vector.multi_reduction <add>, %17, %cst_12 [1] : vector<16x4xf32> to vector<16xf32>
    %19 = vector.shape_cast %18 : vector<16xf32> to vector<16x1xf32>
    %20 = vector.broadcast %19 : vector<16x1xf32> to vector<16x4xf32>
    %21 = arith.divf %17, %20 : vector<16x4xf32>
    %22 = tpu.iota {dimensions = array<i32: 1>} : vector<16x4xi32>
    %cst_13 = arith.constant dense<0xFF800000> : vector<16xf32>
    %23 = vector.multi_reduction <maximumf>, %21, %cst_13 [1] : vector<16x4xf32> to vector<16xf32>
    %24 = vector.shape_cast %23 : vector<16xf32> to vector<16x1xf32>
    %25 = vector.broadcast %24 : vector<16x1xf32> to vector<16x4xf32>
    %26 = arith.cmpf oeq, %21, %25 : vector<16x4xf32>
    %c4_i32 = arith.constant 4 : i32
    %27 = vector.broadcast %c4_i32 : i32 to vector<16x4xi32>
    %28 = arith.select %26, %22, %27 : vector<16x4xi1>, vector<16x4xi32>
    %cst_14 = arith.constant dense<2147483647> : vector<16xi32>
    %29 = vector.multi_reduction <minsi>, %28, %cst_14 [1] : vector<16x4xi32> to vector<16xi32>
    %30 = vector.shape_cast %29 : vector<16xi32> to vector<16x1xi32>
    %31 = vector.broadcast %30 : vector<16x1xi32> to vector<16x4xi32>
    %32 = arith.cmpi eq, %22, %31 : vector<16x4xi32>
    %cst_15 = arith.constant 0xFF800000 : f32
    %33 = vector.broadcast %cst_15 : f32 to vector<16x4xf32>
    %34 = arith.select %32, %33, %21 : vector<16x4xi1>, vector<16x4xf32>
    %cst_16 = arith.constant dense<0xFF800000> : vector<16xf32>
    %35 = vector.multi_reduction <maximumf>, %34, %cst_16 [1] : vector<16x4xf32> to vector<16xf32>
    %36 = vector.shape_cast %35 : vector<16xf32> to vector<16x1xf32>
    %37 = vector.broadcast %36 : vector<16x1xf32> to vector<16x4xf32>
    %38 = arith.cmpf oeq, %34, %37 : vector<16x4xf32>
    %c4_i32_17 = arith.constant 4 : i32
    %39 = vector.broadcast %c4_i32_17 : i32 to vector<16x4xi32>
    %40 = arith.select %38, %22, %39 : vector<16x4xi1>, vector<16x4xi32>
    %cst_18 = arith.constant dense<2147483647> : vector<16xi32>
    %41 = vector.multi_reduction <minsi>, %40, %cst_18 [1] : vector<16x4xi32> to vector<16xi32>
    %42 = vector.shape_cast %41 : vector<16xi32> to vector<16x1xi32>
    %c0_i32 = arith.constant 0 : i32
    %43 = vector.broadcast %c0_i32 : i32 to vector<16x1xi32>
    %44 = arith.cmpi eq, %30, %43 : vector<16x1xi32>
    %45 = arith.extui %44 : vector<16x1xi1> to vector<16x1xi32>
    %46 = arith.sitofp %45 : vector<16x1xi32> to vector<16x1xf32>
    %47 = arith.mulf %24, %46 : vector<16x1xf32>
    %c0_i32_19 = arith.constant 0 : i32
    %48 = vector.broadcast %c0_i32_19 : i32 to vector<16x1xi32>
    %49 = arith.cmpi eq, %42, %48 : vector<16x1xi32>
    %50 = arith.extui %49 : vector<16x1xi1> to vector<16x1xi32>
    %51 = arith.sitofp %50 : vector<16x1xi32> to vector<16x1xf32>
    %52 = arith.mulf %36, %51 : vector<16x1xf32>
    %53 = arith.addf %47, %52 : vector<16x1xf32>
    %c0_20 = arith.constant 0 : index
    %c0_21 = arith.constant 0 : index
    %c0_22 = arith.constant 0 : index
    %54 = vector.load %arg6[%c0_20, %c0_21, %c0_22] : memref<4x16x32xf32, #tpu.memory_space<vmem>>, vector<1x16x32xf32>
    %55 = vector.shape_cast %54 : vector<1x16x32xf32> to vector<16x32xf32>
    %56 = vector.broadcast %53 : vector<16x1xf32> to vector<16x32xf32>
    %57 = arith.mulf %56, %55 : vector<16x32xf32>
    %c1_i32 = arith.constant 1 : i32
    %58 = vector.broadcast %c1_i32 : i32 to vector<16x1xi32>
    %59 = arith.cmpi eq, %30, %58 : vector<16x1xi32>
    %60 = arith.extui %59 : vector<16x1xi1> to vector<16x1xi32>
    %61 = arith.sitofp %60 : vector<16x1xi32> to vector<16x1xf32>
    %62 = arith.mulf %24, %61 : vector<16x1xf32>
    %c1_i32_23 = arith.constant 1 : i32
    %63 = vector.broadcast %c1_i32_23 : i32 to vector<16x1xi32>
    %64 = arith.cmpi eq, %42, %63 : vector<16x1xi32>
    %65 = arith.extui %64 : vector<16x1xi1> to vector<16x1xi32>
    %66 = arith.sitofp %65 : vector<16x1xi32> to vector<16x1xf32>
    %67 = arith.mulf %36, %66 : vector<16x1xf32>
    %68 = arith.addf %62, %67 : vector<16x1xf32>
    %c1 = arith.constant 1 : index
    %c0_24 = arith.constant 0 : index
    %c0_25 = arith.constant 0 : index
    %69 = vector.load %arg6[%c1, %c0_24, %c0_25] : memref<4x16x32xf32, #tpu.memory_space<vmem>>, vector<1x16x32xf32>
    %70 = vector.shape_cast %69 : vector<1x16x32xf32> to vector<16x32xf32>
    %71 = vector.broadcast %68 : vector<16x1xf32> to vector<16x32xf32>
    %72 = arith.mulf %71, %70 : vector<16x32xf32>
    %73 = arith.addf %57, %72 : vector<16x32xf32>
    %c2_i32 = arith.constant 2 : i32
    %74 = vector.broadcast %c2_i32 : i32 to vector<16x1xi32>
    %75 = arith.cmpi eq, %30, %74 : vector<16x1xi32>
    %76 = arith.extui %75 : vector<16x1xi1> to vector<16x1xi32>
    %77 = arith.sitofp %76 : vector<16x1xi32> to vector<16x1xf32>
    %78 = arith.mulf %24, %77 : vector<16x1xf32>
    %c2_i32_26 = arith.constant 2 : i32
    %79 = vector.broadcast %c2_i32_26 : i32 to vector<16x1xi32>
    %80 = arith.cmpi eq, %42, %79 : vector<16x1xi32>
    %81 = arith.extui %80 : vector<16x1xi1> to vector<16x1xi32>
    %82 = arith.sitofp %81 : vector<16x1xi32> to vector<16x1xf32>
    %83 = arith.mulf %36, %82 : vector<16x1xf32>
    %84 = arith.addf %78, %83 : vector<16x1xf32>
    %c2 = arith.constant 2 : index
    %c0_27 = arith.constant 0 : index
    %c0_28 = arith.constant 0 : index
    %85 = vector.load %arg6[%c2, %c0_27, %c0_28] : memref<4x16x32xf32, #tpu.memory_space<vmem>>, vector<1x16x32xf32>
    %86 = vector.shape_cast %85 : vector<1x16x32xf32> to vector<16x32xf32>
    %87 = vector.broadcast %84 : vector<16x1xf32> to vector<16x32xf32>
    %88 = arith.mulf %87, %86 : vector<16x32xf32>
    %89 = arith.addf %73, %88 : vector<16x32xf32>
    %c3_i32 = arith.constant 3 : i32
    %90 = vector.broadcast %c3_i32 : i32 to vector<16x1xi32>
    %91 = arith.cmpi eq, %30, %90 : vector<16x1xi32>
    %92 = arith.extui %91 : vector<16x1xi1> to vector<16x1xi32>
    %93 = arith.sitofp %92 : vector<16x1xi32> to vector<16x1xf32>
    %94 = arith.mulf %24, %93 : vector<16x1xf32>
    %c3_i32_29 = arith.constant 3 : i32
    %95 = vector.broadcast %c3_i32_29 : i32 to vector<16x1xi32>
    %96 = arith.cmpi eq, %42, %95 : vector<16x1xi32>
    %97 = arith.extui %96 : vector<16x1xi1> to vector<16x1xi32>
    %98 = arith.sitofp %97 : vector<16x1xi32> to vector<16x1xf32>
    %99 = arith.mulf %36, %98 : vector<16x1xf32>
    %100 = arith.addf %94, %99 : vector<16x1xf32>
    %c3 = arith.constant 3 : index
    %c0_30 = arith.constant 0 : index
    %c0_31 = arith.constant 0 : index
    %101 = vector.load %arg6[%c3, %c0_30, %c0_31] : memref<4x16x32xf32, #tpu.memory_space<vmem>>, vector<1x16x32xf32>
    %102 = vector.shape_cast %101 : vector<1x16x32xf32> to vector<16x32xf32>
    %103 = vector.broadcast %100 : vector<16x1xf32> to vector<16x32xf32>
    %104 = arith.mulf %103, %102 : vector<16x32xf32>
    %105 = arith.addf %89, %104 : vector<16x32xf32>
    %c0_32 = arith.constant 0 : index
    %c0_33 = arith.constant 0 : index
    %106 = vector.load %arg7[%c0_32, %c0_33] : memref<16x32xf32, #tpu.memory_space<vmem>>, vector<16x32xf32>
    tpu.vector_store %arg7[%c0_32, %c0_33], %105 {strides = array<i32>} : memref<16x32xf32, #tpu.memory_space<vmem>>, vector<16x32xf32>,
    return
  }
  func.func @transform_0(%arg0: i32) -> (i32, i32) {
    %c0_i32 = arith.constant 0 : i32
    %c0_i32_0 = arith.constant 0 : i32
    return %arg0, %c0_i32 : i32, i32
  }
  func.func @transform_1(%arg0: i32) -> (i32, i32) {
    %c0_i32 = arith.constant 0 : i32
    %c0_i32_0 = arith.constant 0 : i32
    %c0_i32_1 = arith.constant 0 : i32
    return %c0_i32, %c0_i32_0 : i32, i32
  }
  func.func @transform_2(%arg0: i32) -> (i32, i32) {
    %c0_i32 = arith.constant 0 : i32
    %c0_i32_0 = arith.constant 0 : i32
    %c0_i32_1 = arith.constant 0 : i32
    return %c0_i32, %c0_i32_0 : i32, i32
  }
  func.func @transform_3(%arg0: i32) -> (i32, i32) {
    %c0_i32 = arith.constant 0 : i32
    %c0_i32_0 = arith.constant 0 : i32
    %c0_i32_1 = arith.constant 0 : i32
    return %c0_i32, %c0_i32_0 : i32, i32
  }
  func.func @transform_4(%arg0: i32) -> (i32, i32) {
    %c0_i32 = arith.constant 0 : i32
    %c0_i32_0 = arith.constant 0 : i32
    %c0_i32_1 = arith.constant 0 : i32
    return %c0_i32, %c0_i32_0 : i32, i32
  }
  func.func @transform_5(%arg0: i32) -> (i32, i32, i32) {
    %c0_i32 = arith.constant 0 : i32
    %c0_i32_0 = arith.constant 0 : i32
    %c0_i32_1 = arith.constant 0 : i32
    return %c0_i32, %arg0, %c0_i32_0 : i32, i32, i32
  }
  func.func @transform_6(%arg0: i32) -> (i32, i32) {
    %c0_i32 = arith.constant 0 : i32
    %c0_i32_0 = arith.constant 0 : i32
    return %arg0, %c0_i32 : i32, i32
  }
}

</mosaic_0001>

<bundles_post_ra>
// kernel: tpu_custom_call.1
= control target key start
LH: loop header
LB: loop body
LE: loop exit
PB: predicated region body
PF: predicated region fallthrough
CT: control target
= control target key end

     0   :  { %11 = vsyncpa [#allocation3], 0  ;;  %s789_s0 = inlined_call_operand.hbm [shape: f32[16,32], index: 0, kind: input, shape index: {}]   ;;  %s790_s1 = inlined_call_operand.vmem [shape: f32[32,32], index: 1, kind: input, shape index: {}]   ;;  %s791_s2 = inlined_call_operand.vmem [shape: f32[1,32], index: 2, kind: input, shape index: {}]   ;;  %s792_s3 = inlined_call_operand.vmem [shape: f32[32,4], index: 3, kind: input, shape index: {}]   ;;  %s793_s4 = inlined_call_operand.vmem [shape: f32[1,4], index: 4, kind: input, shape index: {}]   ;;  %s794_s5 = inlined_call_operand.hbm [shape: f32[4,16,32], index: 5, kind: input, shape index: {}]   ;;  %s795_s6 = inlined_call_operand.hbm [shape: f32[16,32], index: 6, kind: output, shape index: {}]  }
   0x1   :  { %12 = vsyncpa [#allocation6], 0 }
   0x2   :  { %13 = vsyncpa [#allocation4], 0  ;;  %s625_s21 = smov [#allocation2]   ;;  %s553_s25 = scalar_lea.hbm %s789_s0, 256 }
   0x3   :  { %s19_s22 = sshll.u32 %s625_s21, 4  ;;  %p554_p0 = scmp.ne.s32.totalorder %s789_s0, %s553_s25  ;;  %s20_s22 = int_to_ptr.vmem [resolvable:$true] %s19_s22 }
   0x4   :  { %p557_p1 = scmp.lt.u32.totalorder %s553_s25, %s789_s0 }
   0x6   :  { %p559_p2 = pnand %p557_p1, %p554_p0 }
   0x8   :  { %562 = shalt.err (!%p559_p2)
}
   0x9   :  { %s563_s30 = scalar_lea.vmem %s20_s22, 256  ;;  %p568_p4 = scmp.lt.s32.totalorder %s20_s22, %s20_s22 }
   0xa   :  { %p564_p3 = scmp.ne.s32.totalorder %s20_s22, %s563_s30  ;;  %p569_p5 = scmp.lt.s32.totalorder %s563_s30, %s563_s30 }
   0xc   :  { %p570_p6 = por %p569_p5, %p568_p4 }
   0xe   :  { %p571_p7 = pnand %p570_p6, %p564_p3 }
  0x10   :  { %574 = shalt.err (!%p571_p7)
}
  0x11   :  { %s626_s7 = smov 128   ;;  %s627_s8 = smov 8  }
  0x12   :  { %25 = dma.hbm_to_vmem [thread:$0]  %s789_s0, 256, %s20_s22, [#allocation3], %s626_s7, %s626_s7, %s627_s8  }
  0x13   :  { %s628_s11 = smov [#allocation5]   ;;  %s575_s15 = scalar_lea.hbm %s794_s5, 1024 }
  0x14   :  { %s39_s12 = sshll.u32 %s628_s11, 4  ;;  %p576_p8 = scmp.ne.s32.totalorder %s794_s5, %s575_s15  ;;  %s40_s12 = int_to_ptr.vmem [resolvable:$true] %s39_s12 }
  0x15   :  { %p579_p9 = scmp.lt.u32.totalorder %s575_s15, %s794_s5 }
  0x17   :  { %p581_p10 = pnand %p579_p9, %p576_p8 }
  0x19   :  { %584 = shalt.err (!%p581_p10)
}
  0x1a   :  { %s585_s20 = scalar_lea.vmem %s40_s12, 1024  ;;  %p590_p12 = scmp.lt.s32.totalorder %s40_s12, %s40_s12 }
  0x1b   :  { %p586_p11 = scmp.ne.s32.totalorder %s40_s12, %s585_s20  ;;  %p591_p13 = scmp.lt.s32.totalorder %s585_s20, %s585_s20 }
  0x1d   :  { %p592_p0 = por %p591_p13, %p590_p12 }
  0x1f   :  { %p593_p1 = pnand %p592_p0, %p586_p11 }
  0x21   :  { %596 = shalt.err (!%p593_p1)
}
  0x22   :  { %45 = dma.hbm_to_vmem [thread:$0]  %s794_s5, 1024, %s40_s12, [#allocation6], %s626_s7, %s626_s7, %s627_s8  }
  0x23   :  { %619 = dma.done.wait [#allocation3], 256  }
  0x24   :  { %620 = vsyncadd [#allocation3], 4294967040 }
  0x25   :  { %621 = dma.done.wait [#allocation6], 1024  }
  0x26   :  { %622 = vsyncadd [#allocation6], 4294966272  ;;  %vm65_vm0 = vcmask 261120   ;;  %v54_v0 = vld [vmem:[%s790_s1] sm:$0xff]  ;;  %v55_v1 = vld [vmem:[%s790_s1 + $0x8] sm:$0xff]  ;;  %vm241_vm1 = vcmask 31744   ;;  %v264_v46 = vlaneseq }
  0x27   :  { %v56_v2 = vld [vmem:[%s790_s1 + $0x10] sm:$0xff]  ;;  %v523_v3 = vpack.c.bf16 %v55_v1, %v54_v0  ;;  %v57_v4 = vld [vmem:[%s790_s1 + $0x18] sm:$0xff]  ;;  %v52_v5 = vld [vmem:[#allocation2] sm:$0xff] }
  0x28   :  { %v527_v6 = vpack.c.bf16 %v57_v4, %v56_v2  ;;  %509 = vmatprep.mubr.msk.f32.mxu0 %vm65_vm0, %v52_v5  ;;  %v149_v7 = vld [vmem:[%s792_s3] sm:$0xff]  ;;  %v150_v8 = vld [vmem:[%s792_s3 + $0x8] sm:$0xff]  ;;  %v151_v11 = vld [vmem:[%s792_s3 + $0x10] sm:$0xff]  ;;  %v265_v47 = vand.u32 127, %v264_v46 }
  0x29   :  { %524 = vmatprep.subr.bf16.mxu0 %v523_v3  ;;  %v531_v9 = vpack.c.bf16 %v150_v8, %v149_v7  ;;  %v53_v10 = vld [vmem:[#allocation2 + $0x8] sm:$0xff]  ;;  %v152_v12 = vld [vmem:[%s792_s3 + $0x18] sm:$0xff]  ;;  %v467_v14 = vld [vmem:[%s791_s2] ss:$0 sm:$0xff]  ;;  %s630_s2 = smov [#allocation7]  }
  0x2a   :  { %526 = vmatpush3.bf16.msra.mxu0 %v523_v3  ;;  %v535_v13 = vpack.c.bf16 %v152_v12, %v151_v11  ;;  %v470_v21 = vld [vmem:[%s793_s4] ss:$0 sm:$0xff]  ;;  %s454_s3 = sshll.u32 %s630_s2, 4  ;;  %s455_s3 = int_to_ptr.vmem [resolvable:$true] %s454_s3 }
  0x2b   :  { %528 = vmatprep.subr.bf16.mxu0 %v527_v6  ;;  %532 = vmatprep.subr.bf16.mxu1 %v531_v9  ;;  %s597_s4 = scalar_lea.vmem %s455_s3, 256  ;;  %p602_p3 = scmp.lt.s32.totalorder %s455_s3, %s455_s3 }
  0x2c   :  { %534 = vmatpush3.bf16.msra.mxu1 %v531_v9  ;;  %p598_p2 = scmp.ne.s32.totalorder %s455_s3, %s597_s4  ;;  %p603_p4 = scmp.lt.s32.totalorder %s597_s4, %s597_s4 }
  0x2d   :  { %536 = vmatprep.subr.bf16.mxu1 %v535_v13 }
  0x2e   :  { %530 = vmatpush3.bf16.msra.mxu0 %v527_v6  ;;  %p604_p5 = por %p603_p4, %p602_p3 }
  0x30   :  { %538 = vmatpush3.bf16.msra.mxu1 %v535_v13  ;;  %p605_p6 = pnand %p604_p5, %p598_p2 }
  0x31   :  { %510 = vmatmul.mubr.msk.f32.vlgmr.msra.gmra.mrb[0].mxu0 %vm65_vm0, %v53_v10 }
 0x104   :  { %v511_v15 = vpop.f32.mrb[0].mxu0 }
 0x105   :  { %v144_v16 = vadd.f32 %v511_v15, %v467_v14  ;;  %v138_v17 = vpop.f32.mrb[1].mxu0 }
 0x106   :  { %v139_v18 = vadd.f32 %v467_v14, %v138_v17 }
 0x107   :  { %v148_v20 = vmax.f32 %v144_v16, 0.0 }
 0x108   :  { %v147_v19 = vmax.f32 %v139_v18, 0.0 }
 0x10a   :  { %520 = vmatprep.mubr.msk.f32.mxu1 %vm65_vm0, %v147_v19 }
 0x10b   :  { %521 = vmatmul.mubr.msk.f32.vlgmr.msra.gmra.mrb[0].mxu1 %vm65_vm0, %v148_v20 }
 0x1de   :  { %v522_v22 = vpop.f32.mrb[0].mxu1 }
 0x1df   :  { %v232_v23 = vpop.f32.mrb[1].mxu1  ;;  %v238_v25 = vadd.f32 %v522_v22, %v470_v21 }
 0x1e0   :  { %v233_v24 = vadd.f32 %v470_v21, %v232_v23 }
 0x1e1   :  { %v245_v27 = vsel %vm241_vm1, %v238_v25, -inf }
 0x1e2   :  { %v242_v26 = vsel %vm241_vm1, %v233_v24, -inf }
 0x1e3   :  { %243 = vmax.xlane.f32.xlu0 %v242_v26 }
 0x1e7   :  { %246 = vmax.xlane.f32.xlu0 %v245_v27 }
 0x270   :  { %v244_v28 = vpop.xlane.xlu0 %243 }
 0x271   :  { %v248_v29 = vsub.f32 %v233_v24, %v244_v28 }
 0x273   :  { %v250_v30 = vmul.f32 1.442695, %v248_v29 }
 0x274   :  { %v247_v31 = vpop.xlane.xlu0 %246 }
 0x275   :  { %545 = vpow2.f32 %v250_v30  ;;  %v249_v32 = vsub.f32 %v238_v25, %v247_v31 }
 0x277   :  { %v252_v33 = vmul.f32 1.442695, %v249_v32 }
 0x279   :  { %547 = vpow2.f32 %v252_v33 }
 0x27f   :  { %v546_v34 = vpop.eup %545 }
 0x280   :  { %v254_v35 = vsel %vm241_vm1, %v546_v34, 0.0 }
 0x281   :  { %255 = vadd.xlane.f32.xlu1 %v254_v35  ;;  %v629_v35 = vmov 0.0  }
 0x283   :  { %v548_v36 = vpop.eup %547 }
 0x284   :  { %v257_v37 = vsel %vm241_vm1, %v548_v36, 0.0 }
 0x285   :  { %258 = vadd.xlane.f32.xlu1 %v257_v37 }
 0x30e   :  { %v256_v38 = vpop.xlane.xlu1 %255 }
 0x30f   :  { %549 = vrcp.f32 %v256_v38 }
 0x312   :  { %v259_v39 = vpop.xlane.xlu1 %258 }
 0x313   :  { %551 = vrcp.f32 %v259_v39 }
 0x319   :  { %v550_v40 = vpop.eup %549 }
 0x31a   :  { %v261_v41 = vmul.f32 %v550_v40, %v546_v34 }
 0x31c   :  { %v266_v42 = vsel %vm241_vm1, %v261_v41, -inf }
 0x31d   :  { %v552_v43 = vpop.eup %551  ;;  %267 = vmax.xlane.f32.xlu0 %v266_v42 }
 0x31e   :  { %v263_v44 = vmul.f32 %v552_v43, %v548_v36 }
 0x320   :  { %v269_v45 = vsel %vm241_vm1, %v263_v44, -inf }
 0x321   :  { %270 = vmax.xlane.f32.xlu1 %v269_v45 }
 0x3aa   :  { %v736_v48 = vpop.xlane.xlu0 %267 }
 0x3ab   :  { %vm272_vm2 = vcmp.eq.f32.partialorder %v261_v41, %v736_v48 }
 0x3ac   :  { %v274_v49 = vsel %vm272_vm2, %v265_v47, 4 }
 0x3ad   :  { %v276_v50 = vsel %vm241_vm1, %v274_v49, 2147483647 }
 0x3ae   :  { %v740_v51 = vpop.xlane.xlu1 %270  ;;  %v278_v52 = vshra.s32 %v276_v50, 16  ;;  %v277_v58 = vand.u32 65535, %v276_v50 }
 0x3af   :  { %vm273_vm3 = vcmp.eq.f32.partialorder %v263_v44, %v740_v51 }
 0x3b0   :  { %v280_v53 = vcvt.s32.f32 %v278_v52  ;;  %v275_v54 = vsel %vm273_vm3, %v265_v47, 4  ;;  %v279_v60 = vcvt.s32.f32 %v277_v58 }
 0x3b1   :  { %v291_v55 = vsel %vm241_vm1, %v275_v54, 2147483647 }
 0x3b2   :  { %281 = vmin.xlane.f32.xlu0 %v280_v53  ;;  %v293_v56 = vshra.s32 %v291_v55, 16  ;;  %v292_v61 = vand.u32 65535, %v291_v55 }
 0x3b4   :  { %v295_v57 = vcvt.s32.f32 %v293_v56  ;;  %v294_v0 = vcvt.s32.f32 %v292_v61 }
 0x3b6   :  { %296 = vmin.xlane.f32.xlu1 %v295_v57 }
 0x43f   :  { %v282_v59 = vpop.xlane.xlu0 %281 }
 0x440   :  { %vm283_vm4 = vcmp.eq.f32.partialorder %v280_v53, %v282_v59  ;;  %v288_v2 = vcvt.f32.s32 %v282_v59 }
 0x441   :  { %v284_v62 = vsel %vm283_vm4, %v279_v60, inf }
 0x442   :  { %285 = vmin.xlane.f32.xlu0 %v284_v62  ;;  %v289_v4 = vshll.u32 %v288_v2, 16 }
 0x443   :  { %v297_v63 = vpop.xlane.xlu1 %296 }
 0x444   :  { %vm298_vm5 = vcmp.eq.f32.partialorder %v295_v57, %v297_v63  ;;  %v303_v6 = vcvt.f32.s32 %v297_v63 }
 0x445   :  { %v299_v1 = vsel %vm298_vm5, %v294_v0, inf  ;;  %v368_v0 = vld [vmem:[#allocation5] sm:$0xff] }
 0x446   :  { %300 = vmin.xlane.f32.xlu1 %v299_v1  ;;  %v304_v9 = vshll.u32 %v303_v6, 16  ;;  %v391_v1 = vld [vmem:[#allocation5 + $0x10] sm:$0xff] }
 0x4cf   :  { %v286_v3 = vpop.xlane.xlu0 %285 }
 0x4d0   :  { %v287_v5 = vcvt.f32.s32 %v286_v3 }
 0x4d2   :  { %v290_v7 = vadd.s32 %v289_v4, %v287_v5 }
 0x4d3   :  { %v301_v8 = vpop.xlane.xlu1 %300 }
 0x4d4   :  { %v302_v10 = vcvt.f32.s32 %v301_v8  ;;  %vm306_vm6 = vcmp.eq.s32.totalorder %v265_v47, %v290_v7  ;;  %vm350_vm12 = vcmp.eq.s32.totalorder %v290_v7, 0  ;;  %vm372_vm13 = vcmp.eq.s32.totalorder %v290_v7, 1 }
 0x4d5   :  { %v308_v12 = vsel %vm306_vm6, -inf, %v261_v41  ;;  %v473_v36 = vsel %vm350_vm12, 1.0, %v629_v35  ;;  %vm397_vm14 = vcmp.eq.s32.totalorder %v290_v7, 2  ;;  %v477_v37 = vsel %vm372_vm13, 1.0, %v629_v35 }
 0x4d6   :  { %v744_v11 = vadd.s32 %v304_v9, %v302_v10  ;;  %v310_v13 = vsel %vm241_vm1, %v308_v12, -inf  ;;  %vm422_vm15 = vcmp.eq.s32.totalorder %v290_v7, 3  ;;  %v481_v41 = vsel %vm397_vm14, 1.0, %v629_v35 }
 0x4d7   :  { %311 = vmax.xlane.f32.xlu0 %v310_v13  ;;  %v356_v42 = vmul.f32 %v473_v36, %v736_v48  ;;  %v378_v43 = vmul.f32 %v477_v37, %v736_v48  ;;  %v485_v45 = vsel %vm422_vm15, 1.0, %v629_v35  ;;  %v403_v62 = vmul.f32 %v481_v41, %v736_v48 }
 0x4d8   :  { %vm307_vm7 = vcmp.eq.s32.totalorder %v265_v47, %v744_v11  ;;  %vm373_vm2 = vcmp.eq.s32.totalorder %v744_v11, 1  ;;  %vm398_vm3 = vcmp.eq.s32.totalorder %v744_v11, 2  ;;  %vm423_vm4 = vcmp.eq.s32.totalorder %v744_v11, 3 }
 0x4d9   :  { %v309_v14 = vsel %vm307_vm7, -inf, %v263_v44  ;;  %v482_v49 = vsel %vm398_vm3, 1.0, %v629_v35  ;;  %v428_v5 = vmul.f32 %v485_v45, %v736_v48  ;;  %v486_v9 = vsel %vm423_vm4, 1.0, %v629_v35 }
 0x4da   :  { %v313_v15 = vsel %vm241_vm1, %v309_v14, -inf  ;;  %v404_v7 = vmul.f32 %v482_v49, %v740_v51 }
 0x4db   :  { %314 = vmax.xlane.f32.xlu1 %v313_v15  ;;  %v416_v15 = vld [vmem:[#allocation5 + $0x20] sm:$0xff] }
 0x564   :  { %v312_v16 = vpop.xlane.xlu0 %311 }
 0x565   :  { %vm316_vm8 = vcmp.eq.f32.partialorder %v308_v12, %v312_v16 }
 0x566   :  { %v318_v17 = vsel %vm316_vm8, %v265_v47, 4 }
 0x567   :  { %v320_v18 = vsel %vm241_vm1, %v318_v17, 2147483647 }
 0x568   :  { %v750_v19 = vpop.xlane.xlu1 %314  ;;  %v322_v20 = vshra.s32 %v320_v18, 16  ;;  %v321_v26 = vand.u32 65535, %v320_v18 }
 0x569   :  { %vm317_vm9 = vcmp.eq.f32.partialorder %v309_v14, %v750_v19 }
 0x56a   :  { %v324_v21 = vcvt.s32.f32 %v322_v20  ;;  %v319_v22 = vsel %vm317_vm9, %v265_v47, 4  ;;  %v323_v28 = vcvt.s32.f32 %v321_v26  ;;  %v478_v47 = vsel %vm373_vm2, 1.0, %v629_v35 }
 0x56b   :  { %v335_v23 = vsel %vm241_vm1, %v319_v22, 2147483647  ;;  %vm351_vm1 = vcmp.eq.s32.totalorder %v744_v11, 0  ;;  %v379_v6 = vmul.f32 %v478_v47, %v740_v51 }
 0x56c   :  { %325 = vmin.xlane.f32.xlu0 %v324_v21  ;;  %v337_v24 = vshra.s32 %v335_v23, 16  ;;  %v336_v29 = vand.u32 65535, %v335_v23  ;;  %v474_v46 = vsel %vm351_vm1, 1.0, %v629_v35  ;;  %v441_v23 = vld [vmem:[#allocation5 + $0x30] sm:$0xff] }
 0x56d   :  { %v357_v4 = vmul.f32 %v474_v46, %v740_v51 }
 0x56e   :  { %v339_v25 = vcvt.s32.f32 %v337_v24  ;;  %v338_v32 = vcvt.s32.f32 %v336_v29  ;;  %v369_v24 = vld [vmem:[#allocation5 + $0x8] sm:$0xff] }
 0x570   :  { %340 = vmin.xlane.f32.xlu1 %v339_v25 }
 0x5f9   :  { %v326_v27 = vpop.xlane.xlu0 %325 }
 0x5fa   :  { %vm327_vm10 = vcmp.eq.f32.partialorder %v324_v21, %v326_v27  ;;  %v332_v34 = vcvt.f32.s32 %v326_v27 }
 0x5fb   :  { %v328_v30 = vsel %vm327_vm10, %v323_v28, inf }
 0x5fc   :  { %329 = vmin.xlane.f32.xlu0 %v328_v30  ;;  %v333_v39 = vshll.u32 %v332_v34, 16 }
 0x5fd   :  { %v341_v31 = vpop.xlane.xlu1 %340 }
 0x5fe   :  { %vm342_vm11 = vcmp.eq.f32.partialorder %v339_v25, %v341_v31  ;;  %v347_v50 = vcvt.f32.s32 %v341_v31  ;;  %v392_v25 = vld [vmem:[#allocation5 + $0x18] sm:$0xff]  ;;  %v429_v31 = vmul.f32 %v486_v9, %v740_v51 }
 0x5ff   :  { %v343_v33 = vsel %vm342_vm11, %v338_v32, inf  ;;  %v417_v32 = vld [vmem:[#allocation5 + $0x28] sm:$0xff] }
 0x600   :  { %344 = vmin.xlane.f32.xlu1 %v343_v33  ;;  %v348_v61 = vshll.u32 %v347_v50, 16 }
 0x689   :  { %v330_v38 = vpop.xlane.xlu0 %329 }
 0x68a   :  { %v331_v40 = vcvt.f32.s32 %v330_v38  ;;  %v442_v38 = vld [vmem:[#allocation5 + $0x38] sm:$0xff] }
 0x68c   :  { %v334_v44 = vadd.s32 %v333_v39, %v331_v40 }
 0x68d   :  { %v345_v52 = vpop.xlane.xlu1 %344 }
 0x68e   :  { %vm358_vm5 = vcmp.eq.s32.totalorder %v334_v44, 0  ;;  %vm380_vm6 = vcmp.eq.s32.totalorder %v334_v44, 1  ;;  %vm405_vm7 = vcmp.eq.s32.totalorder %v334_v44, 2  ;;  %vm430_vm8 = vcmp.eq.s32.totalorder %v334_v44, 3 }
 0x68f   :  { %v475_v53 = vsel %vm358_vm5, 1.0, %v629_v35  ;;  %v479_v54 = vsel %vm380_vm6, 1.0, %v629_v35  ;;  %v483_v55 = vsel %vm405_vm7, 1.0, %v629_v35  ;;  %v487_v56 = vsel %vm430_vm8, 1.0, %v629_v35 }
 0x690   :  { %v364_v57 = vmul.f32 %v475_v53, %v312_v16  ;;  %v386_v58 = vmul.f32 %v479_v54, %v312_v16  ;;  %v411_v59 = vmul.f32 %v483_v55, %v312_v16  ;;  %v436_v60 = vmul.f32 %v487_v56, %v312_v16 }
 0x691   :  { %v346_v63 = vcvt.f32.s32 %v345_v52 }
 0x692   :  { %v366_v2 = vadd.f32 %v364_v57, %v356_v42  ;;  %v388_v3 = vadd.f32 %v386_v58, %v378_v43  ;;  %v413_v10 = vadd.f32 %v411_v59, %v403_v62  ;;  %v438_v14 = vadd.f32 %v436_v60, %v428_v5 }
 0x693   :  { %v349_v8 = vadd.s32 %v348_v61, %v346_v63 }
 0x694   :  { %v370_v12 = vmul.f32 %v368_v0, %v366_v2  ;;  %v393_v13 = vmul.f32 %v391_v1, %v388_v3  ;;  %v418_v27 = vmul.f32 %v416_v15, %v413_v10  ;;  %v443_v34 = vmul.f32 %v441_v23, %v438_v14 }
 0x695   :  { %vm359_vm9 = vcmp.eq.s32.totalorder %v349_v8, 0  ;;  %vm381_vm10 = vcmp.eq.s32.totalorder %v349_v8, 1  ;;  %vm406_vm11 = vcmp.eq.s32.totalorder %v349_v8, 2  ;;  %vm431_vm12 = vcmp.eq.s32.totalorder %v349_v8, 3 }
 0x696   :  { %v476_v16 = vsel %vm359_vm9, 1.0, %v629_v35  ;;  %v480_v17 = vsel %vm381_vm10, 1.0, %v629_v35  ;;  %v484_v48 = vsel %vm406_vm11, 1.0, %v629_v35  ;;  %v488_v18 = vsel %vm431_vm12, 1.0, %v629_v35 }
 0x697   :  { %v365_v20 = vmul.f32 %v476_v16, %v750_v19  ;;  %v387_v21 = vmul.f32 %v480_v17, %v750_v19  ;;  %v412_v11 = vmul.f32 %v484_v48, %v750_v19  ;;  %v437_v22 = vmul.f32 %v488_v18, %v750_v19 }
 0x698   :  { %v395_v26 = vadd.f32 %v393_v13, %v370_v12 }
 0x699   :  { %v367_v28 = vadd.f32 %v365_v20, %v357_v4  ;;  %v389_v29 = vadd.f32 %v387_v21, %v379_v6  ;;  %v414_v30 = vadd.f32 %v412_v11, %v404_v7  ;;  %v439_v37 = vadd.f32 %v437_v22, %v429_v31 }
 0x69a   :  { %v420_v33 = vadd.f32 %v418_v27, %v395_v26 }
 0x69b   :  { %v371_v35 = vmul.f32 %v369_v24, %v367_v28  ;;  %v394_v36 = vmul.f32 %v392_v25, %v389_v29  ;;  %v419_v19 = vmul.f32 %v417_v32, %v414_v30  ;;  %v444_v42 = vmul.f32 %v442_v38, %v439_v37 }
 0x69c   :  { %v445_v39 = vadd.f32 %v443_v34, %v420_v33 }
 0x69d   :  { %v396_v40 = vadd.f32 %v394_v36, %v371_v35 }
 0x69e   :  { %447 = vst.msk [vmem:[#allocation7] sm:$0xff] %vm65_vm0, %v445_v39 }
 0x69f   :  { %v421_v41 = vadd.f32 %v419_v19, %v396_v40 }
 0x6a1   :  { %v446_v43 = vadd.f32 %v444_v42, %v421_v41 }
 0x6a3   :  { %448 = vst.msk [vmem:[#allocation7 + $0x8] sm:$0xff] %vm65_vm0, %v446_v43 }
 0x6a4   :  { %608 = shalt.err (!%p605_p6)
}
 0x6a5   :  { %s609_s20 = scalar_lea.hbm %s795_s6, 256 }
 0x6a6   :  { %p610_p7 = scmp.ne.s32.totalorder %s795_s6, %s609_s20  ;;  %p613_p8 = scmp.lt.u32.totalorder %s609_s20, %s795_s6 }
 0x6a8   :  { %p615_p9 = pnand %p613_p8, %p610_p7 }
 0x6aa   :  { %618 = shalt.err (!%p615_p9)
}
 0x6ab   :  { %460 = dma.vmem_to_hbm [thread:$0]  %s455_s3, 256, %s795_s6, [#allocation4], %s626_s7, %s626_s7, %s627_s8  }
 0x6ac   :  { %623 = dma.done.wait [#allocation4], 256  }
 0x6ad   :  { %624 = vsyncadd [#allocation4], 4294967040 }
 0x6ae   :  { %464 = vsyncpa [#allocation3], 1 }
 0x6af   :  { %465 = vsyncpa [#allocation6], 1 }
 0x6b0   :  { %466 = vsyncpa [#allocation4], 1 }

</bundles_post_ra>
